<compile_context>
chip_gen: v5e
topology: v5e:2x2
jax: 0.10.0
libtpu: 0.0.40
codegen_flags: <defaults>
</compile_context>

<pallas_src>
import jax
import jax.numpy as jnp
from jax.experimental import pallas as pl
from jax.experimental.pallas import tpu as pltpu

LANE = 128


def _flatten_shape(shape, start_dim, end_dim):
    """Reproduce torch.flatten shape semantics exactly."""
    nd = len(shape)
    s = start_dim + nd if start_dim < 0 else start_dim
    e = end_dim + nd if end_dim < 0 else end_dim
    assert 0 <= s <= e < nd, "invalid start_dim/end_dim"
    collapsed = 1
    for d in shape[s:e + 1]:
        collapsed *= d
    return tuple(shape[:s]) + (collapsed,) + tuple(shape[e + 1:])


def _copy_kernel(x_ref, o_ref):
    # Identity copy of one VMEM tile; flatten's "hot path" is pure data movement.
    o_ref[...] = x_ref[...]


def _tiled_copy_2d(x2d):
    """Streaming identity copy of a (rows, C) array through VMEM."""
    rows, C = x2d.shape
    itemsize = jnp.dtype(x2d.dtype).itemsize
    # Minimum sublane multiple for the dtype (sub-32-bit dtypes pack along sublanes).
    sub = {1: 32, 2: 16, 4: 8}.get(itemsize, 8)

    # Target ~4 MiB blocks: measured copy bandwidth plateaus (~85-86% of HBM
    # roofline) around 1-4 MiB tiles; 2 (in+out) x 2 (double buffer) x 4 MiB
    # = 16 MiB stays far under v7x's 64 MiB VMEM and v5e's scoped budget.
    target_bytes = 4 * 1024 * 1024
    target_rows = max(sub, (target_bytes // (C * itemsize)) // sub * sub)

    if rows <= target_rows:
        tile_rows = rows          # full array dim -> always a legal block shape
    else:
        tile_rows = target_rows   # ragged last block is masked by Pallas

    grid = (pl.cdiv(rows, tile_rows),)
    tile_bytes = tile_rows * C * itemsize
    # 2 double-buffers x (input + output) blocks + headroom for internal scratch.
    vmem_limit = min(int(4 * tile_bytes + (8 << 20)), 64 << 20)

    return pl.pallas_call(
        _copy_kernel,
        out_shape=jax.ShapeDtypeStruct((rows, C), x2d.dtype),
        grid_spec=pltpu.PrefetchScalarGridSpec(
            num_scalar_prefetch=0,
            grid=grid,
            in_specs=[pl.BlockSpec((tile_rows, C), lambda i: (i, 0))],
            out_specs=pl.BlockSpec((tile_rows, C), lambda i: (i, 0)),
        ),
        # Let XLA alias/donate the input buffer: avoids materializing a second
        # full-size HBM array for what is logically an in-place reshape.
        input_output_aliases={0: 0},
        compiler_params=pltpu.CompilerParams(
            dimension_semantics=("parallel",),  # shards the row grid across TCs (v7x)
            vmem_limit_bytes=vmem_limit,
        ),
    )(x2d)


def pallas_flatten(x, start_dim=0, end_dim=-1):
    out_shape = _flatten_shape(x.shape, start_dim, end_dim)
    total = x.size
    if total == 0:
        return jnp.reshape(x, out_shape)

    # Widest lane-aligned last dim that divides the element count: longer
    # contiguous rows -> longer DMA bursts / unmasked full-width stores.
    C = 0
    for cand in (4096, 2048, 1024, 512, 256, 128):
        if total % cand == 0:
            C = cand
            break

    if C:
        x2d = x.reshape(total // C, C)          # metadata-only layout plumbing
        out2d = _tiled_copy_2d(x2d)
        return out2d.reshape(out_shape)

    # Element count not a multiple of 128: pad the flat view up to a lane
    # multiple, stream it through the same tiled path, then slice it back.
    # (Avoids the whole-array single-VMEM-block fallback, which would OOM for
    # large awkwardly-sized inputs.)
    flat = x.reshape(total)
    padded = total + (-total) % LANE
    xp = jnp.pad(flat, (0, padded - total))
    outp = _tiled_copy_2d(xp.reshape(padded // LANE, LANE))
    return outp.reshape(padded)[:total].reshape(out_shape)


if __name__ == "__main__":
    key = jax.random.PRNGKey(0)
    x = jax.random.normal(key, (2, 4, 16, 16), dtype=jnp.float32)

    # SimpleFlattenModule() defaults: start_dim=0, end_dim=-1
    y = pallas_flatten(x, start_dim=0, end_dim=-1)
    y = jax.block_until_ready(y)

    ref = x.reshape(_flatten_shape(x.shape, 0, -1))
    assert y.shape == (2 * 4 * 16 * 16,), y.shape
    assert y.dtype == x.dtype
    assert bool(jnp.all(y == ref))

    # Non-default dims exercise the same kernel with torch-matching shape math.
    y2 = jax.block_until_ready(pallas_flatten(x, start_dim=1, end_dim=-1))
    assert y2.shape == (2, 4 * 16 * 16), y2.shape
    assert bool(jnp.all(y2 == x.reshape(2, -1)))

    print("KERNEL_OK")
</pallas_src>

<mosaic_0001>
module attributes {stable_mosaic.version = 11 : i64} {
  func.func @_copy_kernel(%arg0: i32, %arg1: memref<1x2048xf32, #tpu.memory_space<vmem>>, %arg2: memref<1x2048xf32, #tpu.memory_space<vmem>>) attributes {dimension_semantics = [#tpu.dimension_semantics<parallel>], iteration_bounds = array<i64: 1>, scalar_prefetch = 0 : i64, scratch_operands = 0 : i64, tpu.core_type = #tpu.core_type<tc>, window_params = [{transform_indices = @transform_0, window_bounds = array<i64: 1, 2048>}, {transform_indices = @transform_1, window_bounds = array<i64: 1, 2048>}]} {
    %c0 = arith.constant 0 : index
    %c0_0 = arith.constant 0 : index
    %0 = vector.load %arg1[%c0, %c0_0] : memref<1x2048xf32, #tpu.memory_space<vmem>>, vector<1x2048xf32>
    %c0_1 = arith.constant 0 : index
    %c0_2 = arith.constant 0 : index
    %1 = vector.load %arg2[%c0_1, %c0_2] : memref<1x2048xf32, #tpu.memory_space<vmem>>, vector<1x2048xf32>
    tpu.vector_store %arg2[%c0_1, %c0_2], %0 {strides = array<i32>} : memref<1x2048xf32, #tpu.memory_space<vmem>>, vector<1x2048xf32>,
    return
  }
  func.func @transform_0(%arg0: i32) -> (i32, i32) {
    %c0_i32 = arith.constant 0 : i32
    %c0_i32_0 = arith.constant 0 : i32
    return %arg0, %c0_i32 : i32, i32
  }
  func.func @transform_1(%arg0: i32) -> (i32, i32) {
    %c0_i32 = arith.constant 0 : i32
    %c0_i32_0 = arith.constant 0 : i32
    return %arg0, %c0_i32 : i32, i32
  }
}

</mosaic_0001>

<bundles_post_ra>
// kernel: tpu_custom_call.1
= control target key start
LH: loop header
LB: loop body
LE: loop exit
PB: predicated region body
PF: predicated region fallthrough
CT: control target
= control target key end

     0   :  { %6 = vsyncpa [#allocation3], 0  ;;  %s116_s0 = inlined_call_operand.hbm [shape: f32[1,2048], index: 0, kind: input, shape index: {}, may-alias: {0,1}]   ;;  %s117_s1 = inlined_call_operand.hbm [shape: f32[1,2048], index: 1, kind: output, shape index: {}, may-alias: {0,1}]  }
   0x1   :  { %7 = vsyncpa [#allocation4], 0  ;;  %s13_s8 = sshll.u32 %s116_s0, 4  ;;  %s98_s9 = smov [#allocation2]   ;;  %s14_s8 = int_to_ptr.hbm [resolvable:$true] %s13_s8 }
   0x2   :  { %s15_s10 = sshll.u32 %s98_s9, 4  ;;  %s16_s10 = int_to_ptr.vmem [resolvable:$true] %s15_s10 }
   0x3   :  { %18 = dma.hbm_to_vmem [thread:$0]  %s14_s8, 256, %s16_s10, [#allocation3]  }
   0x4   :  { %94 = dma.done.wait [#allocation3], 256  }
   0x5   :  { %95 = vsyncadd [#allocation3], 4294967040  ;;  %s99_s11 = smov [#allocation5]   ;;  %s34_s15 = sshll.u32 %s117_s1, 4  ;;  %v23_v0 = vld [vmem:[#allocation2] sm:$0xff]  ;;  %v24_v1 = vld [vmem:[#allocation2 + $0x8] sm:$0xff]  ;;  %s35_s15 = int_to_ptr.hbm [resolvable:$true] %s34_s15 }
   0x6   :  { %s32_s12 = sshll.u32 %s99_s11, 4  ;;  %25 = vst [vmem:[#allocation5] sm:$0xff] %v23_v0  ;;  %s33_s12 = int_to_ptr.vmem [resolvable:$true] %s32_s12 }
   0x7   :  { %26 = vst [vmem:[#allocation5 + $0x8] sm:$0xff] %v24_v1 }
   0x8   :  { %37 = dma.vmem_to_hbm [thread:$0]  %s33_s12, 256, %s35_s15, [#allocation4]  }
   0x9   :  { %96 = dma.done.wait [#allocation4], 256  }
   0xa   :  { %97 = vsyncadd [#allocation4], 4294967040 }
   0xb   :  { %42 = vsyncpa [#allocation3], 1 }
   0xc   :  { %43 = vsyncpa [#allocation4], 1 }

</bundles_post_ra>
